<compile_context>
chip_gen: v6e
topology: v6e:2x2x1
jax: 0.10.0
libtpu: 0.0.40
codegen_flags: <defaults>
</compile_context>

<pallas_src>
import jax
import jax.numpy as jnp
import numpy as np
from jax.experimental import pallas as pl
from jax.experimental.pallas import tpu as pltpu

_NEG_PAD = -1e30   # padding logit; exp(pad - max) underflows to exactly 0.
                   # NOTE: fine for f32/bf16 inputs; fp16 inputs would need a
                   # finite fp16 value (e.g. -6e4) to avoid -inf - -inf = NaN.


def _round_up(x, m):
    return ((x + m - 1) // m) * m


def _choose_tile_b(batch, c_pad, itemsize):
    """Batch tile (lane axis): multiple of 128, sized against a VMEM estimate.

    Per unit of tile_b the working set costs roughly:
      logits : 2 buffers x c_pad sublanes x itemsize
      labels : 2 buffers x 8 sublanes x 4 B  (int32 row is sublane-padded to 8)
      temps  : f32 (x - m), e, masked-e + ~6 single-row (1, tile_b) arrays
    """
    per_lane = 2 * c_pad * itemsize + 2 * 8 * 4 + (2 * c_pad + 6 * 8) * 4
    budget = 12 * 1024 * 1024
    cap = max(128, (budget // per_lane) // 128 * 128)
    return int(max(128, min(_round_up(batch, 128), cap, 8192)))


def _focal_loss_kernel(fparams_ref, counts_ref, logits_ref, labels_ref, out_ref):
    """Grid = (task, batch_block).

    Layout: classes on sublanes (C padded to a multiple of 8), batch on lanes.
    Emits an independent partial sum per (task, batch_block), so both grid
    axes are 'parallel' (v7x can split the batch across its 2 TensorCores).
    """
    t = pl.program_id(0)
    b = pl.program_id(1)
    tile_b = logits_ref.shape[-1]
    n_valid = counts_ref[t]                       # real batch size of this task
    has_work = b * tile_b < n_valid

    @pl.when(jnp.logical_not(has_work))
    def _padding_block():                         # whole block is batch padding
        out_ref[...] = jnp.zeros_like(out_ref)

    @pl.when(has_work)
    def _compute():
        alpha = fparams_ref[0]                    # f32 scalars in SMEM
        gamma = fparams_ref[1]
        inv_n = fparams_ref[2 + t]                # 1 / real batch size

        x = logits_ref[0].astype(jnp.float32)     # (C_pad, TILE_B)
        labels = labels_ref[0]                    # (1, TILE_B) int32

        # Numerically stable softmax pieces; reductions run over the tiny
        # sublane (class) axis so the lane axis stays 128-sample dense.
        m = jnp.max(x, axis=0, keepdims=True)     # (1, TILE_B)
        e = jnp.exp(x - m)                        # padded classes -> exactly 0
        denom = jnp.sum(e, axis=0, keepdims=True)
        cls = jax.lax.broadcasted_iota(jnp.int32, x.shape, 0)
        num = jnp.sum(jnp.where(cls == labels, e, 0.0), axis=0, keepdims=True)
        pt = num / denom                          # (1, TILE_B)

        # Class-balanced alpha_t, focal weight, per-sample loss (== reference).
        alpha_t = jnp.where(labels == 0, 1.0 - alpha, alpha)
        focal_w = jnp.power(1.0 - pt, gamma)      # pow(0, 0) == 1 like torch
        loss = -alpha_t * focal_w * jnp.log(pt + 1e-8)
        loss = jnp.where(labels == 1, 1.5 * loss, loss)

        # Mask batch-padding lanes, emit this block's share of the batch mean.
        pos = jax.lax.broadcasted_iota(jnp.int32, loss.shape, 1) + b * tile_b
        loss = jnp.where(pos < n_valid, loss, 0.0)
        out_ref[...] = jnp.zeros_like(out_ref) + jnp.sum(loss) * inv_n


def _fused_focal_forward_impl(logits_list, labels_list, alpha_gamma, weights):
    """All tasks in one gridded pallas_call; returns (per-task losses, total)."""
    num_tasks = len(logits_list)
    n_list = [int(l.shape[0]) for l in logits_list]
    c_pad = _round_up(max(int(l.shape[1]) for l in logits_list), 8)
    dtype = jnp.result_type(*[l.dtype for l in logits_list])
    tile_b = _choose_tile_b(max(n_list), c_pad, jnp.dtype(dtype).itemsize)
    b_pad = _round_up(max(n_list), tile_b)
    nb = b_pad // tile_b

    # Classes -> sublanes (pad to c_pad), batch -> lanes (pad to b_pad).
    # TODO(synk): a fully zero-copy ingest (pl.ANY + manual DMA of the native
    # (B, C) arrays, or MXU segment-matrix lane packing) would also remove this
    # remaining ~(c_pad/C)x transposed wrapper copy.
    stacked_logits = jnp.stack([
        jnp.pad(l.T.astype(dtype),
                ((0, c_pad - l.shape[1]), (0, b_pad - l.shape[0])),
                constant_values=_NEG_PAD)
        for l in logits_list])                                 # (T, C_pad, B_pad)
    stacked_labels = jnp.stack([
        jnp.pad(lb.astype(jnp.int32), (0, b_pad - lb.shape[0]))
        for lb in labels_list])[:, None, :]                    # (T, 1, B_pad)

    counts = jnp.array(n_list, dtype=jnp.int32)                       # (T,)
    fparams = jnp.concatenate([alpha_gamma.astype(jnp.float32),
                               1.0 / counts.astype(jnp.float32)])     # (2+T,)

    # TODO(synk): for strongly imbalanced per-task batch sizes, flatten the grid
    # over valid (task, block) pairs via scalar prefetch so padding blocks are
    # not even DMA'd (currently they only skip compute via pl.when).
    out = pl.pallas_call(
        _focal_loss_kernel,
        out_shape=jax.ShapeDtypeStruct((num_tasks, nb, 8, 128), jnp.float32),
        grid_spec=pltpu.PrefetchScalarGridSpec(
            num_scalar_prefetch=0,
            grid=(num_tasks, nb),
            in_specs=[
                pl.BlockSpec(memory_space=pltpu.MemorySpace.SMEM),     # fparams
                pl.BlockSpec(memory_space=pltpu.MemorySpace.SMEM),     # counts
                pl.BlockSpec((1, c_pad, tile_b), lambda t, b: (t, 0, b)),
                pl.BlockSpec((1, 1, tile_b), lambda t, b: (t, 0, b)),
            ],
            out_specs=pl.BlockSpec((1, 1, 8, 128), lambda t, b: (t, b, 0, 0)),
        ),
        compiler_params=pltpu.CompilerParams(
            dimension_semantics=("parallel", "parallel"),
            vmem_limit_bytes=32 * 1024 * 1024),
    )(fparams, counts, stacked_logits, stacked_labels)

    # Tiny (T, nb) partial-sum reduction stays on device inside the same jit.
    task_losses = jnp.sum(out[:, :, 0, 0], axis=1)                    # (T,)
    total_loss = jnp.sum(weights.astype(jnp.float32) * task_losses)
    return task_losses, total_loss


_fused_focal_forward = jax.jit(_fused_focal_forward_impl)


class ImbalancedFocalLoss:
    """JAX/Pallas port of the PyTorch ImbalancedFocalLoss module."""

    def __init__(self, task_weights, alpha=0.25, gamma=2.0, dynamic_adjustment=True):
        self.task_weights = task_weights
        self.alpha = alpha
        self.gamma = gamma
        self.dynamic_adjustment = dynamic_adjustment
        self.training_step = 0

    def __call__(self, predictions, targets):
        if self.dynamic_adjustment:
            dynamic_alpha = max(0.1, self.alpha - self.training_step * 0.0001)
            dynamic_gamma = min(3.0, self.gamma + self.training_step * 0.0001)
        else:
            dynamic_alpha, dynamic_gamma = self.alpha, self.gamma

        names = [n for n in predictions if n in targets]
        losses = {}
        if not names:
            losses["total_loss"] = jnp.float32(0.0)
            self.training_step += 1
            return losses

        logits_tuple = tuple(predictions[n] for n in names)
        labels_tuple = tuple(targets[n] for n in names)
        alpha_gamma = jnp.array([dynamic_alpha, dynamic_gamma], dtype=jnp.float32)
        weights = jnp.array([float(self.task_weights.get(n, 1.0)) for n in names],
                            dtype=jnp.float32)

        task_losses, total_loss = _fused_focal_forward(
            logits_tuple, labels_tuple, alpha_gamma, weights)

        for i, n in enumerate(names):
            losses[f"loss_{n}"] = task_losses[i]
        losses["total_loss"] = total_loss
        self.training_step += 1
        return losses


def _reference_task_loss(logits, labels, alpha, gamma):
    """Pure-JAX reference for correctness check."""
    probs = jax.nn.softmax(logits.astype(jnp.float32), axis=1)
    pt = jnp.take_along_axis(probs, labels[:, None].astype(jnp.int32), axis=1)[:, 0]
    alpha_t = jnp.where(labels == 0, 1.0 - alpha, alpha)
    loss = -alpha_t * jnp.power(1.0 - pt, gamma) * jnp.log(pt + 1e-8)
    loss = jnp.where(labels == 1, loss * 1.5, loss)
    return jnp.mean(loss)


if __name__ == "__main__":
    key = jax.random.PRNGKey(0)
    k1, k2, k3, k4 = jax.random.split(key, 4)

    # Small, deliberately imbalanced shapes (different B and C per task) to
    # exercise class-sublane padding and batch-lane masking.
    B_A, C_A = 8, 4
    B_B, C_B = 6, 6
    task_weights = {"task_a": 1.0, "task_b": 0.5}

    predictions = {
        "task_a": jax.random.normal(k1, (B_A, C_A), dtype=jnp.float32),
        "task_b": jax.random.normal(k2, (B_B, C_B), dtype=jnp.float32),
    }
    targets = {
        "task_a": jax.random.randint(k3, (B_A,), 0, C_A, dtype=jnp.int32),
        "task_b": jax.random.randint(k4, (B_B,), 0, C_B, dtype=jnp.int32),
    }

    loss_mod = ImbalancedFocalLoss(task_weights, alpha=0.25, gamma=2.0,
                                   dynamic_adjustment=True)

    # ---- call 1 (training_step == 0) ----
    losses0 = loss_mod(predictions, targets)
    jax.block_until_ready(losses0["total_loss"])

    ref_a = _reference_task_loss(predictions["task_a"], targets["task_a"], 0.25, 2.0)
    ref_b = _reference_task_loss(predictions["task_b"], targets["task_b"], 0.25, 2.0)
    np.testing.assert_allclose(np.asarray(losses0["loss_task_a"]), np.asarray(ref_a),
                               rtol=1e-5, atol=1e-6)
    np.testing.assert_allclose(np.asarray(losses0["loss_task_b"]), np.asarray(ref_b),
                               rtol=1e-5, atol=1e-6)
    np.testing.assert_allclose(np.asarray(losses0["total_loss"]),
                               np.asarray(1.0 * ref_a + 0.5 * ref_b),
                               rtol=1e-5, atol=1e-6)

    # ---- call 2 (training_step == 1, exercises the dynamic schedule) ----
    losses1 = loss_mod(predictions, targets)
    jax.block_until_ready(losses1["total_loss"])
    a1 = max(0.1, 0.25 - 1 * 0.0001)
    g1 = min(3.0, 2.0 + 1 * 0.0001)
    ref_a1 = _reference_task_loss(predictions["task_a"], targets["task_a"], a1, g1)
    ref_b1 = _reference_task_loss(predictions["task_b"], targets["task_b"], a1, g1)
    np.testing.assert_allclose(np.asarray(losses1["total_loss"]),
                               np.asarray(1.0 * ref_a1 + 0.5 * ref_b1),
                               rtol=1e-5, atol=1e-6)

    print("KERNEL_OK")
</pallas_src>

<mosaic_0001>
module attributes {stable_mosaic.version = 11 : i64} {
  func.func @_focal_loss_kernel(%arg0: i32, %arg1: i32, %arg2: memref<4xf32, #tpu.memory_space<smem>>, %arg3: memref<2xi32, #tpu.memory_space<smem>>, %arg4: memref<1x8x128xf32, #tpu.memory_space<vmem>>, %arg5: memref<1x1x128xi32, #tpu.memory_space<vmem>>, %arg6: memref<1x1x8x128xf32, #tpu.memory_space<vmem>>) attributes {dimension_semantics = [#tpu.dimension_semantics<parallel>, #tpu.dimension_semantics<parallel>], iteration_bounds = array<i64: 2, 1>, scalar_prefetch = 0 : i64, scratch_operands = 0 : i64, tpu.core_type = #tpu.core_type<tc>, window_params = [{transform_indices = @transform_0, window_bounds = array<i64: 4>}, {transform_indices = @transform_1, window_bounds = array<i64: 2>}, {transform_indices = @transform_2, window_bounds = array<i64: 1, 8, 128>}, {transform_indices = @transform_3, window_bounds = array<i64: 1, 1, 128>}, {transform_indices = @transform_4, window_bounds = array<i64: 1, 1, 8, 128>}]} {
    %0 = arith.index_cast %arg0 : i32 to index
    %1 = memref.load %arg3[%0] : memref<2xi32, #tpu.memory_space<smem>>
    %c128_i32 = arith.constant 128 : i32
    %2 = arith.muli %arg1, %c128_i32 : i32
    %3 = arith.cmpi slt, %2, %1 : i32
    %true = arith.constant true
    %4 = arith.xori %3, %true : i1
    %5 = arith.extui %4 : i1 to i32
    %c0_i32 = arith.constant 0 : i32
    %6 = arith.cmpi ne, %5, %c0_i32 : i32
    scf.if %6 {
      %cst = arith.constant 0.000000e+00 : f32
      %9 = vector.broadcast %cst : f32 to vector<1x1x8x128xf32>
      %c0 = arith.constant 0 : index
      %c0_1 = arith.constant 0 : index
      %c0_2 = arith.constant 0 : index
      %c0_3 = arith.constant 0 : index
      %10 = vector.load %arg6[%c0, %c0_1, %c0_2, %c0_3] : memref<1x1x8x128xf32, #tpu.memory_space<vmem>>, vector<1x1x8x128xf32>
      tpu.vector_store %arg6[%c0, %c0_1, %c0_2, %c0_3], %9 {strides = array<i32>} : memref<1x1x8x128xf32, #tpu.memory_space<vmem>>, vector<1x1x8x128xf32>,
    } else {
    }
    %7 = arith.extui %3 : i1 to i32
    %c0_i32_0 = arith.constant 0 : i32
    %8 = arith.cmpi ne, %7, %c0_i32_0 : i32
    scf.if %8 {
      %c0 = arith.constant 0 : index
      %9 = memref.load %arg2[%c0] : memref<4xf32, #tpu.memory_space<smem>>
      %c1 = arith.constant 1 : index
      %10 = memref.load %arg2[%c1] : memref<4xf32, #tpu.memory_space<smem>>
      %c2_i32 = arith.constant 2 : i32
      %11 = arith.addi %c2_i32, %arg0 : i32
      %12 = arith.index_cast %11 : i32 to index
      %13 = memref.load %arg2[%12] : memref<4xf32, #tpu.memory_space<smem>>
      %c0_1 = arith.constant 0 : index
      %c0_2 = arith.constant 0 : index
      %c0_3 = arith.constant 0 : index
      %14 = vector.load %arg4[%c0_1, %c0_2, %c0_3] : memref<1x8x128xf32, #tpu.memory_space<vmem>>, vector<1x8x128xf32>
      %15 = vector.shape_cast %14 : vector<1x8x128xf32> to vector<8x128xf32>
      %c0_4 = arith.constant 0 : index
      %c0_5 = arith.constant 0 : index
      %c0_6 = arith.constant 0 : index
      %16 = vector.load %arg5[%c0_4, %c0_5, %c0_6] : memref<1x1x128xi32, #tpu.memory_space<vmem>>, vector<1x1x128xi32>
      %17 = vector.shape_cast %16 : vector<1x1x128xi32> to vector<1x128xi32>
      %cst = arith.constant dense<0xFF800000> : vector<128xf32>
      %18 = vector.multi_reduction <maximumf>, %15, %cst [0] : vector<8x128xf32> to vector<128xf32>
      %19 = vector.shape_cast %18 : vector<128xf32> to vector<1x128xf32>
      %20 = vector.broadcast %19 : vector<1x128xf32> to vector<8x128xf32>
      %21 = arith.subf %15, %20 : vector<8x128xf32>
      %22 = math.exp %21 : vector<8x128xf32>
      %cst_7 = arith.constant dense<0.000000e+00> : vector<128xf32>
      %23 = vector.multi_reduction <add>, %22, %cst_7 [0] : vector<8x128xf32> to vector<128xf32>
      %24 = vector.shape_cast %23 : vector<128xf32> to vector<1x128xf32>
      %25 = tpu.iota {dimensions = array<i32: 0>} : vector<8x128xi32>
      %26 = vector.broadcast %17 : vector<1x128xi32> to vector<8x128xi32>
      %27 = arith.cmpi eq, %25, %26 : vector<8x128xi32>
      %cst_8 = arith.constant 0.000000e+00 : f32
      %28 = vector.broadcast %cst_8 : f32 to vector<8x128xf32>
      %29 = arith.select %27, %22, %28 : vector<8x128xi1>, vector<8x128xf32>
      %cst_9 = arith.constant dense<0.000000e+00> : vector<128xf32>
      %30 = vector.multi_reduction <add>, %29, %cst_9 [0] : vector<8x128xf32> to vector<128xf32>
      %31 = vector.shape_cast %30 : vector<128xf32> to vector<1x128xf32>
      %32 = arith.divf %31, %24 : vector<1x128xf32>
      %c0_i32_10 = arith.constant 0 : i32
      %33 = vector.broadcast %c0_i32_10 : i32 to vector<1x128xi32>
      %34 = arith.cmpi eq, %17, %33 : vector<1x128xi32>
      %cst_11 = arith.constant 1.000000e+00 : f32
      %35 = arith.subf %cst_11, %9 : f32
      %36 = vector.broadcast %35 : f32 to vector<1x128xf32>
      %37 = vector.broadcast %9 : f32 to vector<1x128xf32>
      %38 = arith.select %34, %36, %37 : vector<1x128xi1>, vector<1x128xf32>
      %cst_12 = arith.constant 1.000000e+00 : f32
      %39 = vector.broadcast %cst_12 : f32 to vector<1x128xf32>
      %40 = arith.subf %39, %32 : vector<1x128xf32>
      %41 = vector.broadcast %10 : f32 to vector<1x128xf32>
      %42 = math.powf %40, %41 : vector<1x128xf32>
      %cst_13 = arith.constant 0.000000e+00 : f32
      %43 = vector.broadcast %cst_13 : f32 to vector<1x128xf32>
      %44 = arith.subf %43, %38 : vector<1x128xf32>
      %45 = arith.mulf %44, %42 : vector<1x128xf32>
      %cst_14 = arith.constant 9.99999993E-9 : f32
      %46 = vector.broadcast %cst_14 : f32 to vector<1x128xf32>
      %47 = arith.addf %32, %46 : vector<1x128xf32>
      %48 = math.log %47 : vector<1x128xf32>
      %49 = arith.mulf %45, %48 : vector<1x128xf32>
      %c1_i32 = arith.constant 1 : i32
      %50 = vector.broadcast %c1_i32 : i32 to vector<1x128xi32>
      %51 = arith.cmpi eq, %17, %50 : vector<1x128xi32>
      %cst_15 = arith.constant 1.500000e+00 : f32
      %52 = vector.broadcast %cst_15 : f32 to vector<1x128xf32>
      %53 = arith.mulf %52, %49 : vector<1x128xf32>
      %54 = arith.select %51, %53, %49 : vector<1x128xi1>, vector<1x128xf32>
      %55 = tpu.iota {dimensions = array<i32: 1>} : vector<1x128xi32>
      %c128_i32_16 = arith.constant 128 : i32
      %56 = arith.muli %arg1, %c128_i32_16 : i32
      %57 = vector.broadcast %56 : i32 to vector<1x128xi32>
      %58 = arith.addi %55, %57 : vector<1x128xi32>
      %59 = vector.broadcast %1 : i32 to vector<1x128xi32>
      %60 = arith.cmpi slt, %58, %59 : vector<1x128xi32>
      %cst_17 = arith.constant 0.000000e+00 : f32
      %61 = vector.broadcast %cst_17 : f32 to vector<1x128xf32>
      %62 = arith.select %60, %54, %61 : vector<1x128xi1>, vector<1x128xf32>
      %cst_18 = arith.constant 0.000000e+00 : f32
      %63 = vector.broadcast %cst_18 : f32 to vector<1x1x8x128xf32>
      %64 = vector.shape_cast %62 : vector<1x128xf32> to vector<1x1x128xf32>
      %cst_19 = arith.constant dense<0.000000e+00> : vector<1xf32>
      %65 = vector.multi_reduction <add>, %64, %cst_19 [1, 2] : vector<1x1x128xf32> to vector<1xf32>
      %66 = vector.shape_cast %65 : vector<1xf32> to vector<1x1x1xf32>
      %67 = vector.extract %66[0, 0, 0] : f32 from vector<1x1x1xf32>
      %68 = arith.mulf %67, %13 : f32
      %69 = vector.broadcast %68 : f32 to vector<1x1x8x128xf32>
      %70 = arith.addf %63, %69 : vector<1x1x8x128xf32>
      %c0_20 = arith.constant 0 : index
      %c0_21 = arith.constant 0 : index
      %c0_22 = arith.constant 0 : index
      %c0_23 = arith.constant 0 : index
      %71 = vector.load %arg6[%c0_20, %c0_21, %c0_22, %c0_23] : memref<1x1x8x128xf32, #tpu.memory_space<vmem>>, vector<1x1x8x128xf32>
      tpu.vector_store %arg6[%c0_20, %c0_21, %c0_22, %c0_23], %70 {strides = array<i32>} : memref<1x1x8x128xf32, #tpu.memory_space<vmem>>, vector<1x1x8x128xf32>,
    } else {
    }
    return
  }
  func.func @transform_0(%arg0: i32, %arg1: i32) -> i32 {
    %c0_i32 = arith.constant 0 : i32
    %c0_i32_0 = arith.constant 0 : i32
    return %c0_i32 : i32
  }
  func.func @transform_1(%arg0: i32, %arg1: i32) -> i32 {
    %c0_i32 = arith.constant 0 : i32
    %c0_i32_0 = arith.constant 0 : i32
    return %c0_i32 : i32
  }
  func.func @transform_2(%arg0: i32, %arg1: i32) -> (i32, i32, i32) {
    %c0_i32 = arith.constant 0 : i32
    %c0_i32_0 = arith.constant 0 : i32
    return %arg0, %c0_i32, %arg1 : i32, i32, i32
  }
  func.func @transform_3(%arg0: i32, %arg1: i32) -> (i32, i32, i32) {
    %c0_i32 = arith.constant 0 : i32
    %c0_i32_0 = arith.constant 0 : i32
    return %arg0, %c0_i32, %arg1 : i32, i32, i32
  }
  func.func @transform_4(%arg0: i32, %arg1: i32) -> (i32, i32, i32, i32) {
    %c0_i32 = arith.constant 0 : i32
    %c0_i32_0 = arith.constant 0 : i32
    %c0_i32_1 = arith.constant 0 : i32
    return %arg0, %arg1, %c0_i32, %c0_i32_0 : i32, i32, i32, i32
  }
}

</mosaic_0001>

<bundles_post_ra>
// kernel: _fused_focal_forward_impl.1
= control target key start
LH: loop header
LB: loop body
LE: loop exit
PB: predicated region body
PF: predicated region fallthrough
CT: control target
= control target key end

     0   :  { %9 = vsyncpa [#allocation3], 0  ;;  %s862_s0 = inlined_call_operand.vmem [shape: f32[4], index: 0, kind: input, shape index: {}]   ;;  %s863_s1 = inlined_call_operand.vmem [shape: s32[2], index: 1, kind: input, shape index: {}]   ;;  %s864_s2 = inlined_call_operand.vmem [shape: f32[2,8,128], index: 2, kind: input, shape index: {}]   ;;  %s865_s3 = inlined_call_operand.vmem [shape: s32[2,1,128], index: 3, kind: input, shape index: {}]   ;;  %s866_s4 = inlined_call_operand.vmem [shape: f32[2,1,8,128], index: 4, kind: output, shape index: {}]  }
   0x1   :  { %10 = vsyncpa [#allocation5], 0  ;;  %s694_s15 = smov 0   ;;  %s696_s16 = smov 0  }
   0x2   :  { %s698_s17 = smov 0  }
   0x3 LB: > { %s472_s18 = sadd.s32 4294967295, %s662_s17   ;;  %s28_s19 = sadd.s32 1, %s658_s16  ;;  %s662_s17 = sphi %s698_s17, %s16_s17   ;;  %s658_s16 = sphi %s696_s16, %s882_s16   ;;  %s654_s15 = sphi %s694_s15, %s881_s15  }
   0x4   : > { %p30_p0 = scmp.ge.s32.totalorder %s28_s19, 2  ;;  %p474_p1 = scmp.ge.s32.totalorder %s662_s17, 1 }
   0x5   : > { %p159_p2 = scmp.lt.s32.totalorder %s662_s17, 3  ;;  %p719_p4 = scmp.eq.s32.totalorder %s472_s18, 0 }
   0x6   : > { %s884_s19 = smov (%p30_p0, %s28_s19), 0  ;;  %s172_s24 = sshll.u32 %s862_s0, 4  ;;  %s173_s24 = int_to_ptr.vmem [resolvable:$true] %s172_s24 }
   0x7   : > { %p715_p3 = pnand %p474_p1, %p159_p2  ;;  %s183_s27 = sshll.u32 %s863_s1, 4  ;;  %s184_s27 = int_to_ptr.vmem [resolvable:$true] %s183_s27 }
   0x8   : > { %s871_s21 = scalar_select %p719_p4, 1, 0 }
   0x9   : > { %s870_s20 = scalar_select %p715_p3, 1, 0 }
   0xa   : > { %p552_p5 = pneg %p715_p3  ;;  %s602_s29 = scalar_lea.vmem %s173_s24, 16 }
   0xb   : > { %p603_p7 = scmp.ne.s32.totalorder %s173_s24, %s602_s29  ;;  %p610_p11 = scmp.lt.s32.totalorder %s173_s24, %s173_s24 }
   0xc   : > { %p733_p6 = pnand %p719_p4, %p552_p5  ;;  %p611_p12 = scmp.lt.s32.totalorder %s602_s29, %s602_s29 }
   0xe   : > { %p604_p8 = pneg %p733_p6  ;;  %p612_p13 = por %p611_p12, %p610_p11 }
  0x10   : > { %p605_p9 = pnand %p604_p8, %p603_p7 }
  0x12   : > { %p606_p10 = pneg %p605_p9 }
  0x14   : > { %p613_p0 = pnand %p612_p13, %p606_p10 }
  0x16   : > { %616 = shalt.err (!%p613_p0)
}
  0x17   : > { %s664_s30 = smov [#allocation2]   ;;  %s617_s5 = scalar_lea.vmem %s184_s27, 16 }
  0x18   : > { %555 = dma.vmem_to_smem (!%p733_p6), %s173_s24, 16, %s664_s30, [#allocation3]  }
  0x19   : > { %p618_p1 = scmp.ne.s32.totalorder %s184_s27, %s617_s5  ;;  %p625_p4 = scmp.lt.s32.totalorder %s184_s27, %s184_s27 }
  0x1a   : > { %p626_p3 = scmp.lt.s32.totalorder %s617_s5, %s617_s5 }
  0x1b   : > { %p620_p2 = pnand %p618_p1, %p604_p8 }
  0x1c   : > { %p627_p7 = por %p626_p3, %p625_p4 }
  0x1d   : > { %p621_p5 = pneg %p620_p2 }
  0x1f   : > { %p628_p9 = pnand %p627_p7, %p621_p5 }
  0x21   : > { %631 = shalt.err (!%p628_p9)
}
  0x22   : > { %s665_s6 = smov [#allocation4]   ;;  %p873_p10 = scmp.ne.s32.totalorder %s870_s20, 0 }
  0x23   : > { %558 = dma.vmem_to_smem (!%p733_p6), %s184_s27, 16, %s665_s6, [#allocation5]  }
  0x24   : > { %215 = sbr.rel (%p873_p10) target bundleno = 384 (0x180), region = 36  ;;  %p874_p11 = scmp.ne.s32.totalorder (!%p873_p10), %s871_s21, 0 }
  0x29   : > { %645 = dma.done.wait (%p874_p11), [#allocation3], 16  }
  0x2a   : > { %647 = vsyncadd (%p874_p11), [#allocation3], 4294967280 }
  0x2b   : > { %649 = dma.done.wait (%p874_p11), [#allocation5], 16  }
  0x2c   : > { %651 = vsyncadd (%p874_p11), [#allocation5], 4294967280 }
  0x2d   : > { %225 = sfence }
  0x2e   : > { %p256_p3 = scmp.lt.s32.totalorder %s654_s15, 1  ;;  %s755_s7 = sld [smem:[#allocation4 + %s654_s15]] }
  0x30   : > { %s257_s8 = scalar_select %p256_p3, %s654_s15, 1 }
  0x32   : > { %s481_s9 = sshll.u32 %s257_s8, 3  ;;  %s268_s12 = scalar_lea.vmem %s865_s3, %s257_s8 }
  0x33   : > { %s262_s18 = scalar_lea.vmem %s864_s2, %s481_s9  ;;  %s767_s22 = scalar_lea.vmem %s866_s4, %s481_s9 }
  0x34   : > { %p485_p4 = scmp.gt.s32.totalorder %s755_s7, 0 }
  0x36   : > { %282 = sbr.rel (%p485_p4) target bundleno = 61 (0x3d), region = 48 }
  0x3b   : > { %v666_v0 = vmov 0.0  }
  0x3c   : > { %283 = vst [vmem:[%s767_s22] sm:$0xff] %v666_v0 }
  0x3d PF: > { %p486_p6 = scmp.le.s32.totalorder %s755_s7, 0 }
  0x3e   : > { %s487_s23 = sld [smem:[#allocation2 + $0x1]] (!%p486_p6)  ;;  %s289_s26 = sadd.s32 (!%p486_p6), 2, %s654_s15 }
  0x3f   : > { %286 = sbr.rel (%p486_p6) target bundleno = 384 (0x180), region = 52  ;;  %s793_s24 = sld [smem:[#allocation2]] (!%p486_p6) }
  0x40   : > { %s290_s27 = sld [smem:[#allocation2 + %s289_s26]] (!%p486_p6) }
  0x44   : > { %v291_v1 = vld [vmem:[%s262_s18] sm:$0xff]  ;;  %v308_v8 = vlaneseq  ;;  %v782_v33 = vstv %s487_s23  ;;  %v667_v44 = vmov 2139095040   ;;  %v668_v48 = vmov 0  }
  0x45   : > { %v293_v2 = vrot.slane %v291_v1, 4  ;;  %v773_v13 = vld [vmem:[%s268_s12] sm:$0x1]  ;;  %v494_v34 = vand.u32 2147483647, %v782_v33  ;;  %v499_v36 = vtrunc.f32 %v782_v33  ;;  %vm498_vm6 = vcmp.lt.f32.partialorder %v782_v33, 0 }
  0x46   : > { %v309_v11 = vshrl.u32 %v308_v8, 7  ;;  %v530_v45 = vsel %vm498_vm6, 0, %v667_v44  ;;  %s325_s25 = ssub.f32 1.0, %s793_s24  ;;  %v518_v49 = vsel %vm498_vm6, 2139095040, %v668_v48  ;;  %v327_v53 = vstv %s793_s24 }
  0x47   : > { %v294_v3 = vmax.f32 %v291_v1, %v293_v2  ;;  %v503_v35 = vtrunc.f32 %v494_v34  ;;  %vm495_vm1 = vcmp.eq.f32.partialorder %v494_v34, 2139095040  ;;  %vm500_vm2 = vcmp.ne.f32.partialorder %v782_v33, %v499_v36 }
  0x48   : > { %v312_v12 = vsub.s32 0, %v309_v11  ;;  %vm789_vm3 = vmor %vm500_vm2, %vm495_vm1  ;;  %vm502_vm10 = vcmp.lt.f32.partialorder %v494_v34, 1266679808  ;;  %v531_v47 = vxor.u32 2147483648, %v530_v45  ;;  %v326_v52 = vstv %s325_s25 }
  0x49   : > { %v295_v4 = vrot.slane %v294_v3, 2  ;;  %v504_v37 = vcvt.f32.s32 %v503_v35  ;;  %vm507_vm5 = vmneg %vm789_vm3 }
  0x4a   : > { %v313_v14 = vrot.slane %v773_v13, %v312_v12 }
  0x4b   : > { %v296_v5 = vmax.f32 %v294_v3, %v295_v4  ;;  %v505_v40 = vand.u32 1, %v504_v37 }
  0x4c   : > { %vm314_vm0 = vcmp.eq.s32.totalorder %v309_v11, %v313_v14 }
  0x4d   : > { %v297_v6 = vrot.slane %v296_v5, 1  ;;  %vm506_vm4 = vcmp.eq.s32.totalorder %v505_v40, 1 }
  0x4e   : > { %vm508_vm9 = vmand %vm506_vm4, %vm507_vm5  ;;  %vm324_vm4 = vcmp.eq.s32.totalorder %v773_v13, 0 }
  0x4f   : > { %v298_v7 = vmax.f32 %v296_v5, %v297_v6  ;;  %vm813_vm14 = vmand %vm502_vm10, %vm508_vm9  ;;  %vm496_vm9 = vcmp.eq.f32.partialorder %v782_v33, 0  ;;  %v328_v59 = vsel %vm324_vm4, %v326_v52, %v327_v53 }
  0x50   : > { %v532_v55 = vsel %vm813_vm14, %v531_v47, %v530_v45 }
  0x51   : > { %v299_v9 = vsub.f32 %v291_v1, %v298_v7  ;;  %v332_v1 = vsub.f32 0.0, %v328_v59  ;;  %v342_v7 = vand.u32 127, %v308_v8 }
  0x53   : > { %v300_v10 = vmul.f32 1.442695, %v299_v9  ;;  %v345_v9 = vstv %s755_s7 }
  0x55   : > { %592 = vpow2.f32 %v300_v10 }
  0x62   : > { %v593_v15 = vpop.eup %592 }
  0x63   : > { %v302_v16 = vrot.slane %v593_v15, 4  ;;  %v315_v17 = vsel %vm314_vm0, %v593_v15, 0.0 }
  0x64   : > { %v316_v19 = vrot.slane %v315_v17, 4 }
  0x65   : > { %v303_v18 = vadd.f32 %v593_v15, %v302_v16 }
  0x66   : > { %v317_v22 = vadd.f32 %v316_v19, %v315_v17 }
  0x67   : > { %v304_v20 = vrot.slane %v303_v18, 2 }
  0x68   : > { %v318_v25 = vrot.slane %v317_v22, 2 }
  0x69   : > { %v305_v21 = vadd.f32 %v304_v20, %v303_v18 }
  0x6a   : > { %v319_v26 = vadd.f32 %v318_v25, %v317_v22 }
  0x6b   : > { %v306_v23 = vrot.slane %v305_v21, 1 }
  0x6c   : > { %v320_v27 = vrot.slane %v319_v26, 1 }
  0x6d   : > { %v307_v24 = vadd.f32 %v306_v23, %v305_v21 }
  0x6e   : > { %v321_v28 = vadd.f32 %v320_v27, %v319_v26 }
  0x6f   : > { %594 = vrcp.f32 %v307_v24 }
  0x7c   : > { %v595_v29 = vpop.eup %594 }
  0x7d   : > { %v323_v30 = vmul.f32 %v595_v29, %v321_v28 }
  0x7f   : > { %v776_v31 = vsub.f32 1.0, %v323_v30  ;;  %v334_v42 = vadd.f32 1e-08, %v323_v30 }
  0x81   : > { %v779_v32 = vand.u32 2147483647, %v776_v31  ;;  %vm511_vm7 = vcmp.eq.f32.partialorder %v776_v31, 0  ;;  %vm510_vm13 = vcmp.lt.f32.partialorder %v776_v31, 0  ;;  %vm513_vm2 = vcmp.lt.s32.totalorder %v776_v31, 0 }
  0x82   : > { %vm804_vm11 = vmand %vm498_vm6, %vm511_vm7  ;;  %vm527_vm5 = vcmp.eq.f32.partialorder %v776_v31, 3212836864  ;;  %vm512_vm10 = vcmp.eq.f32.partialorder %v776_v31, 1065353216  ;;  %v533_v60 = vsel %vm510_vm13, %v532_v55, %v530_v45 }
  0x83   : > { %596 = vlog2.f32 %v779_v32  ;;  %vm514_vm8 = vcmp.gt.f32.partialorder %v779_v32, 1065353216  ;;  %vm516_vm0 = vmand %vm510_vm13, %vm789_vm3  ;;  %vm338_vm13 = vcmp.eq.s32.totalorder %v773_v13, 1 }
  0x84   : > { %vm524_vm12 = vmxor %vm498_vm6, %vm514_vm8  ;;  %vm535_vm6 = vcmp.ne.f32.partialorder %v776_v31, %v776_v31  ;;  %vm536_vm8 = vcmp.ne.f32.partialorder %v782_v33, %v782_v33 }
  0x85   : > { %vm525_vm15 = vmor %vm804_vm11, %vm524_vm12  ;;  %vm515_vm11 = vcmp.eq.f32.partialorder %v779_v32, 2139095040 }
  0x86   : > { %v526_v51 = vsel %vm525_vm15, 2139095040, %v668_v48  ;;  %vm520_vm3 = vmand %vm513_vm2, %vm813_vm14  ;;  %vm497_vm14 = vcmp.eq.f32.partialorder %v782_v33, 1065353216  ;;  %vm348_vm15 = vcmask 1040384  }
  0x87   : > { %v528_v58 = vsel %vm527_vm5, 1065353216, %v526_v51  ;;  %vm539_vm12 = vmor %vm512_vm10, %vm496_vm9 }
  0x90   : > { %v597_v38 = vpop.eup %596 }
  0x91   : > { %v492_v39 = vmul.f32 %v597_v38, %v782_v33 }
  0x93   : > { %598 = vpow2.f32 %v492_v39 }
  0x94   : > { %600 = vlog2.f32 %v334_v42 }
  0xa0   : > { %v599_v50 = vpop.eup %598 }
  0xa1   : > { %v517_v54 = vsel %vm516_vm0, 2143289344, %v599_v50  ;;  %v601_v62 = vpop.eup %600 }
  0xa2   : > { %v519_v56 = vsel %vm511_vm7, %v518_v49, %v517_v54  ;;  %vm537_vm7 = vmor %vm535_vm6, %vm536_vm8  ;;  %v336_v4 = vmul.f32 0.6931472, %v601_v62 }
  0xa3   : > { %v521_v57 = vxor.u32 2147483648, %v519_v56 }
  0xa5   : > { %v522_v61 = vsel %vm520_vm3, %v521_v57, %v519_v56 }
  0xa6   : > { %v529_v63 = vsel %vm495_vm1, %v528_v58, %v522_v61  ;;  %vm346_vm1 = vcmp.lt.s32.totalorder %v342_v7, %v345_v9 }
  0xa7   : > { %v534_v0 = vsel %vm515_vm11, %v533_v60, %v529_v63 }
  0xa8   : > { %v538_v2 = vsel %vm537_vm7, 2143289344, %v534_v0 }
  0xa9   : > { %v540_v3 = vsel %vm539_vm12, 1065353216, %v538_v2 }
  0xaa   : > { %v541_v5 = vsel %vm497_vm14, %v776_v31, %v540_v3 }
  0xab   : > { %v333_v6 = vmul.f32 %v541_v5, %v332_v1 }
  0xad   : > { %v337_v10 = vmul.f32 %v336_v4, %v333_v6 }
  0xaf   : > { %v339_v11 = vmul.f32 1.5, %v337_v10 }
  0xb1   : > { %v340_v12 = vsel %vm338_vm13, %v339_v11, %v337_v10 }
  0xb2   : > { %v347_v14 = vsel %vm346_vm1, %v340_v12, 0.0 }
  0xb3   : > { %v349_v15 = vsel %vm348_vm15, %v347_v14, 0.0 }
  0xb4   : > { %350 = vadd.xlane.f32.xlu0 %v349_v15 }
 0x13d   : > { %v351_v16 = vpop.xlane.xlu0 %350 }
 0x13e   : > { %v352_v17 = vrot.slane %v351_v16, 4 }
 0x140   : > { %v353_v18 = vadd.f32 %v352_v17, %v351_v16 }
 0x142   : > { %v354_v19 = vrot.slane %v353_v18, 2 }
 0x144   : > { %v355_v20 = vadd.f32 %v354_v19, %v353_v18 }
 0x146   : > { %v356_v21 = vrot.slane %v355_v20, 1 }
 0x148   : > { %v357_v8 = vadd.f32 %v356_v21, %v355_v20 }
 0x14a   : > { %542 = vpush %v357_v8 }
 0x17b   : > { %s543_s28 = spop %542 }
 0x17c   : > { %s359_s29 = smul.f32 %s543_s28, %s290_s27 }
 0x17e   : > { %v360_v13 = vstv %s359_s29 }
 0x17f   : > { %362 = vst [vmem:[%s767_s22] sm:$0xff] %v360_v13 }
 0x180 PF: > { %s16_s17 = sadd.s32 1, %s662_s17   ;;  %s881_s15 = smov %s658_s16 }
 0x181   : > { %p13_p8 = scmp.ge.s32.totalorder %s16_s17, 4   ;;  %s882_s16 = smov %s884_s19 }
 0x183   :  { %15 = sbr.rel (!%p13_p8) target bundleno = 3 (0x3), region = 86 }
 0x188   :  { %388 = vsyncpa [#allocation3], 1 }
 0x189   :  { %390 = vsyncpa [#allocation3 + $0x1], 1 }
 0x18a   :  { %391 = vsyncpa [#allocation5], 1 }

</bundles_post_ra>
